<compile_context>
chip_gen: v6e
topology: v6e:2x2x1
jax: 0.10.0
libtpu: 0.0.40
codegen_flags: <defaults>
</compile_context>

<pallas_src>
import functools
import math

import jax
import jax.numpy as jnp
import numpy as np
from jax.experimental import pallas as pl
from jax.experimental.pallas import tpu as pltpu


# ----------------------------------------------------------------------------
# Fused Pallas kernel: encoder projection + causal conv/sigmoid + magnitudes
# ----------------------------------------------------------------------------

def _fused_forward_kernel(x_ref, wbig_ref, b_ref, xe_ref, logit_ref, mag_ref,
                          *, fout, t_step, seq_t):
    # x_ref    : (TILE_BT, Fin)      input frames for this tile (compute dtype)
    # wbig_ref : (Fout + t, Fin)     [encoder ; conv-folded] weights (resident)
    # b_ref    : (1,) SMEM           conv bias scalar (f32)
    # xe_ref   : (TILE_BT, Fout)     x_e, channels-last
    # logit_ref, mag_ref : (1, TILE_BT) lane-dense rows (f32)
    tile_bt = x_ref.shape[0]

    # --- single MXU pass per tile: (R, Fin) x (TILE_BT, Fin)^T -> (R, TILE_BT)
    big = jax.lax.dot_general(
        wbig_ref[...], x_ref[...],
        dimension_numbers=(((1,), (1,)), ((), ())),
        preferred_element_type=jnp.float32)
    x_e_t = big[:fout, :]                       # (Fout, TILE_BT), frames on lanes
    z = big[fout:, :]                           # (t,    TILE_BT), per-tap rows

    # --- per-frame L2 magnitude: cheap sublane reduce, lane-dense store -----
    mag_ref[...] = jnp.sqrt(jnp.sum(x_e_t * x_e_t, axis=0, keepdims=True))

    # --- x_e written channels-last; tiny in-VMEM transpose rides the XLU ----
    xe_ref[...] = x_e_t.T.astype(xe_ref.dtype)

    # --- causal Conv1d(out_dim, 1, t) + sigmoid ------------------------------
    # Tiles hold whole sequences, so in-sequence position == local lane index
    # mod T.  Tap j (shift = t-1-j) is aligned with a lane roll (XLU slot) and
    # the causal left edge is an iota compare (no pads, no cross-seq leakage).
    pos = jax.lax.broadcasted_iota(jnp.int32, (1, tile_bt), 1) % seq_t
    acc = jnp.full((1, tile_bt), b_ref[0], dtype=jnp.float32)
    for j in range(t_step):                     # static, tiny tap loop
        shift = t_step - 1 - j
        row = z[j:j + 1, :]
        if shift:
            row = pltpu.roll(row, shift=shift, axis=1)
            row = jnp.where(pos >= shift, row, 0.0)
        acc = acc + row
    logit_ref[...] = jax.nn.sigmoid(acc)


def _select_tile(bt, seq_t, tile_target):
    """Lane tile: multiple of T (whole sequences) and of 128 (lane-dense)."""
    unit = (seq_t * 128) // math.gcd(seq_t, 128)          # lcm(T, 128)
    if unit <= max(tile_target, 4096):
        tile = unit * max(1, tile_target // unit)
        tile = min(tile, unit * ((bt + unit - 1) // unit))  # don't overshoot
    else:
        # TODO(synk): T with a huge lcm(T,128) -> single whole-array tile.
        tile = bt
    bt_pad = ((bt + tile - 1) // tile) * tile
    return tile, bt_pad


def fused_encoder_classifier(x, w_enc_t, w_cls_t, b_cls, *,
                             compute_dtype=jnp.float32, tile_target=512):
    """Returns (x_e (B,T,Fout), logits (B,T,1), feat_magnitudes (B,T))."""
    B, T, Fin = x.shape
    Fout = w_enc_t.shape[0]
    t_step = w_cls_t.shape[0]
    BT = B * T

    # Fold the classifier into the encoder LHS (one MXU pass -> x_e^T and z).
    hp = jax.lax.Precision.HIGHEST
    w_fold = jnp.dot(w_cls_t.astype(jnp.float32), w_enc_t.astype(jnp.float32),
                     precision=hp)                                  # (t, Fin)
    w_big = jnp.concatenate(
        [w_enc_t.astype(jnp.float32), w_fold], axis=0).astype(compute_dtype)

    tile_bt, bt_pad = _select_tile(BT, T, tile_target)
    grid = (bt_pad // tile_bt,)

    x2d = x.reshape(BT, Fin).astype(compute_dtype)   # natural view, no transpose
    if bt_pad != BT:
        x2d = jnp.pad(x2d, ((0, bt_pad - BT), (0, 0)))

    # VMEM budget (double-buffered tiles + resident weights), with headroom.
    dsz = jnp.dtype(compute_dtype).itemsize
    step_bytes = (2 * (tile_bt * Fin * dsz + tile_bt * Fout * dsz
                       + 2 * tile_bt * 4)
                  + (Fout + t_step) * Fin * dsz)
    vmem_limit = int(min(max(4 * step_bytes, 8 << 20), 48 << 20))

    kernel = functools.partial(_fused_forward_kernel,
                               fout=Fout, t_step=t_step, seq_t=T)

    xe2d, logit_row, mag_row = pl.pallas_call(
        kernel,
        out_shape=(
            jax.ShapeDtypeStruct((bt_pad, Fout), compute_dtype),
            jax.ShapeDtypeStruct((1, bt_pad), jnp.float32),
            jax.ShapeDtypeStruct((1, bt_pad), jnp.float32),
        ),
        grid=grid,
        in_specs=[
            pl.BlockSpec((tile_bt, Fin), lambda i: (i, 0)),        # frames
            pl.BlockSpec((Fout + t_step, Fin), lambda i: (0, 0)),  # weights
            pl.BlockSpec(memory_space=pltpu.MemorySpace.SMEM),     # bias
        ],
        out_specs=(
            pl.BlockSpec((tile_bt, Fout), lambda i: (i, 0)),       # x_e
            pl.BlockSpec((1, tile_bt), lambda i: (0, i)),          # logits
            pl.BlockSpec((1, tile_bt), lambda i: (0, i)),          # magnitudes
        ),
        compiler_params=pltpu.CompilerParams(
            dimension_semantics=("parallel",),
            vmem_limit_bytes=vmem_limit),
    )(x2d, w_big, b_cls.astype(jnp.float32))

    x_e = xe2d[:BT].reshape(B, T, Fout)
    logits = logit_row[0, :BT].reshape(B, T, 1)
    feat_mag = mag_row[0, :BT].reshape(B, T)
    return x_e, logits, feat_mag


# ----------------------------------------------------------------------------
# MSNSD (top-k magnitude selection). top_k / gather / dropout are
# data-dependent index ops; they stay in plain JAX. The feature magnitudes are
# produced by the fused Pallas kernel and passed in.
# ----------------------------------------------------------------------------

def msnsd(features, scores, feat_magnitudes, bs, batch_size,
          dropout_rate, key, k, training):
    T = features.shape[1]
    scores = scores.reshape(bs, -1)[..., None]

    normal_features = features[:batch_size]
    normal_scores = scores[:batch_size]
    abnormal_features = features[batch_size:]
    abnormal_scores = scores[batch_size:]

    feat_magnitudes = feat_magnitudes.reshape(bs, -1)
    nfea_magnitudes = feat_magnitudes[:batch_size]
    afea_magnitudes = feat_magnitudes[batch_size:]
    n_size = nfea_magnitudes.shape[0]

    if n_size == 1:
        afea_magnitudes = nfea_magnitudes
        abnormal_scores = normal_scores
        abnormal_features = normal_features

    if key is None:
        key = jax.random.PRNGKey(0)
    k1, k2 = jax.random.split(key)

    def drop_mask(kk):
        if training and dropout_rate > 0.0:
            keep = 1.0 - dropout_rate
            m = jax.random.bernoulli(kk, keep, nfea_magnitudes.shape)
            return m.astype(jnp.float32) / keep
        return jnp.ones_like(nfea_magnitudes)

    # abnormal branch
    afea_drop = afea_magnitudes * drop_mask(k1)
    idx_abn = jax.lax.top_k(afea_drop, k)[1]
    total_select_abn_feature = jnp.take_along_axis(
        abnormal_features.reshape(n_size, T, -1), idx_abn[:, :, None], axis=1)
    score_abnormal = jnp.mean(
        jnp.take_along_axis(abnormal_scores, idx_abn[:, :, None], axis=1), axis=1)

    # normal branch
    nfea_drop = nfea_magnitudes * drop_mask(k2)
    idx_normal = jax.lax.top_k(nfea_drop, k)[1]
    total_select_nor_feature = jnp.take_along_axis(
        normal_features.reshape(n_size, T, -1), idx_normal[:, :, None], axis=1)
    score_normal = jnp.mean(
        jnp.take_along_axis(normal_scores, idx_normal[:, :, None], axis=1), axis=1)

    return dict(
        score_abnormal=score_abnormal,
        score_normal=score_normal,
        abn_feamagnitude=total_select_abn_feature,
        nor_feamagnitude=total_select_nor_feature,
    )


# ----------------------------------------------------------------------------
# XModel forward
# ----------------------------------------------------------------------------

def xmodel_forward(params, x, c_x, seq_len, *, k, dropout_rate,
                   training=True, dropout_key=None,
                   compute_dtype=jnp.float32, tile_target=512):
    # x: (B, T, feat_dim); c_x / seq_len unused by the stand-in encoder.
    del c_x, seq_len  # TODO(synk): consumed by the unavailable XEncoder
    x_e, logits, feat_mag = fused_encoder_classifier(
        x, params["w_enc_t"], params["w_cls_t"], params["b_cls"],
        compute_dtype=compute_dtype, tile_target=tile_target)
    x_v = {"x": x_e}                                   # channels-last features
    if training:
        output = msnsd(
            x_v["x"], logits, feat_mag, x.shape[0], x.shape[0] // 2,
            dropout_rate, dropout_key, k, training)
        return logits, x_v, output
    return logits, x_v


# ----------------------------------------------------------------------------
# Pure-JAX reference of the fused kernel (for numerical verification)
# ----------------------------------------------------------------------------

def reference_forward(x, w_enc_t, w_cls_t, b_cls):
    B, T, _ = x.shape
    t_step = w_cls_t.shape[0]
    hp = jax.lax.Precision.HIGHEST
    x_e = jnp.einsum("btf,of->bto", x, w_enc_t, precision=hp)
    mag = jnp.sqrt(jnp.sum(x_e * x_e, axis=-1))
    x_pad = jnp.pad(x_e, ((0, 0), (t_step - 1, 0), (0, 0)))
    pre = b_cls[0] + sum(
        jnp.einsum("bto,o->bt", x_pad[:, j:j + T, :], w_cls_t[j], precision=hp)
        for j in range(t_step))
    logits = jax.nn.sigmoid(pre)[..., None]
    return x_e, logits, mag


# ----------------------------------------------------------------------------
# main
# ----------------------------------------------------------------------------

if __name__ == "__main__":
    # small cfg: feat_dim=32, out_dim=16, t_step=3, k=4, dropout=0.3
    B, T = 4, 64
    feat_dim, out_dim = 32, 16
    t_step, k_top, dropout_rate = 3, 4, 0.3
    temp = 0.07
    TILE_TARGET = 128   # small tile so the toy shape still exercises a 2-step grid

    key = jax.random.PRNGKey(0)
    kx, kcx, kw1, kw2, kdrop = jax.random.split(key, 5)

    def xavier_uniform(kk, shape, fan_in, fan_out):
        a = float(np.sqrt(6.0 / (fan_in + fan_out)))
        return jax.random.uniform(kk, shape, jnp.float32, -a, a)

    params = {
        # stand-in encoder projection, stored pre-transposed: (out_dim, feat_dim)
        "w_enc_t": xavier_uniform(kw1, (out_dim, feat_dim), feat_dim, out_dim),
        # Conv1d(out_dim, 1, t_step): PyTorch weight (1, out_dim, t) stored
        # tap-major as (t, out_dim)
        "w_cls_t": xavier_uniform(kw2, (t_step, out_dim), out_dim * t_step, t_step),
        "b_cls": jnp.zeros((1,), jnp.float32),
        # nn.Parameter(ones([]) * log(1/temp)) — unused in forward
        "logit_scale": jnp.array(np.log(1.0 / temp), jnp.float32),
    }

    x = jax.random.normal(kx, (B, T, feat_dim), jnp.float32)
    c_x = jax.random.normal(kcx, (B, T, feat_dim), jnp.float32)
    seq_len = jnp.full((B,), T, jnp.int32)

    # Production-style path: bf16 MXU inputs (f32 accumulation), tiled BT grid.
    logits, x_v, output = xmodel_forward(
        params, x, c_x, seq_len,
        k=k_top, dropout_rate=dropout_rate,
        training=True, dropout_key=kdrop,
        compute_dtype=jnp.bfloat16, tile_target=TILE_TARGET)

    jax.block_until_ready((logits, x_v["x"],
                           output["score_abnormal"], output["score_normal"],
                           output["abn_feamagnitude"], output["nor_feamagnitude"]))

    # Reference for verification.
    x_e_ref, logits_ref, mag_ref = reference_forward(
        x, params["w_enc_t"], params["w_cls_t"], params["b_cls"])

    # (1) Structural check: f32 kernel vs HIGHEST-precision reference at a
    #     tight tolerance (covers MXU multi-pass fp32 vs XLA HIGHEST reference;
    #     any tap/roll misalignment would show up as O(0.1-1) errors).
    x_e32, logits32, mag32 = fused_encoder_classifier(
        x, params["w_enc_t"], params["w_cls_t"], params["b_cls"],
        compute_dtype=jnp.float32, tile_target=TILE_TARGET)
    np.testing.assert_allclose(np.asarray(x_e32), np.asarray(x_e_ref),
                               rtol=1e-4, atol=1e-4)
    np.testing.assert_allclose(np.asarray(logits32), np.asarray(logits_ref),
                               rtol=1e-4, atol=1e-4)
    np.testing.assert_allclose(np.asarray(mag32), np.asarray(mag_ref),
                               rtol=1e-4, atol=1e-4)

    # (2) bf16 path: quantization-level tolerance.
    np.testing.assert_allclose(np.asarray(x_v["x"].astype(jnp.float32)),
                               np.asarray(x_e_ref), rtol=2e-2, atol=2e-2)
    np.testing.assert_allclose(np.asarray(logits), np.asarray(logits_ref),
                               rtol=2e-2, atol=2e-2)

    assert logits.shape == (B, T, 1)
    assert x_v["x"].shape == (B, T, out_dim)
    assert output["score_abnormal"].shape == (B // 2, 1)
    assert output["score_normal"].shape == (B // 2, 1)
    assert output["abn_feamagnitude"].shape == (B // 2, k_top, out_dim)
    assert output["nor_feamagnitude"].shape == (B // 2, k_top, out_dim)
    print("KERNEL_OK")
</pallas_src>

<mosaic_0001>
module attributes {stable_mosaic.version = 11 : i64} {
  func.func @_fused_forward_kernel(%arg0: i32, %arg1: memref<128x32xbf16, #tpu.memory_space<vmem>>, %arg2: memref<19x32xbf16, #tpu.memory_space<vmem>>, %arg3: memref<1xf32, #tpu.memory_space<smem>>, %arg4: memref<128x16xbf16, #tpu.memory_space<vmem>>, %arg5: memref<1x128xf32, #tpu.memory_space<vmem>>, %arg6: memref<1x128xf32, #tpu.memory_space<vmem>>) attributes {dimension_semantics = [#tpu.dimension_semantics<parallel>], iteration_bounds = array<i64: 2>, scalar_prefetch = 0 : i64, scratch_operands = 0 : i64, tpu.core_type = #tpu.core_type<tc>, window_params = [{transform_indices = @transform_0, window_bounds = array<i64: 128, 32>}, {pipeline_mode = #tpu.pipeline_mode<synchronous>, transform_indices = @transform_1, window_bounds = array<i64: 19, 32>}, {transform_indices = @transform_2, window_bounds = array<i64: 1>}, {transform_indices = @transform_3, window_bounds = array<i64: 128, 16>}, {transform_indices = @transform_4, window_bounds = array<i64: 1, 128>}, {transform_indices = @transform_5, window_bounds = array<i64: 1, 128>}]} {
    %c0 = arith.constant 0 : index
    %c0_0 = arith.constant 0 : index
    %0 = vector.load %arg2[%c0, %c0_0] : memref<19x32xbf16, #tpu.memory_space<vmem>>, vector<19x32xbf16>
    %c0_1 = arith.constant 0 : index
    %c0_2 = arith.constant 0 : index
    %1 = vector.load %arg1[%c0_1, %c0_2] : memref<128x32xbf16, #tpu.memory_space<vmem>>, vector<128x32xbf16>
    %cst = arith.constant dense<0.000000e+00> : vector<19x128xf32>
    %2 = tpu.matmul %0, %1, %cst {dimension_numbers = #tpu.dot_dimension_numbers<[1], [1], [0], [0], [0, 0, 1, 0], [], []>} : vector<19x32xbf16>, vector<128x32xbf16>, vector<19x128xf32> -> vector<19x128xf32>
    %3 = vector.extract_strided_slice %2 {offsets = [0, 0], sizes = [16, 128], strides = [1, 1]} : vector<19x128xf32> to vector<16x128xf32>
    %4 = vector.extract_strided_slice %2 {offsets = [16, 0], sizes = [3, 128], strides = [1, 1]} : vector<19x128xf32> to vector<3x128xf32>
    %5 = arith.mulf %3, %3 : vector<16x128xf32>
    %cst_3 = arith.constant dense<0.000000e+00> : vector<128xf32>
    %6 = vector.multi_reduction <add>, %5, %cst_3 [0] : vector<16x128xf32> to vector<128xf32>
    %7 = vector.shape_cast %6 : vector<128xf32> to vector<1x128xf32>
    %8 = math.sqrt %7 : vector<1x128xf32>
    %c0_4 = arith.constant 0 : index
    %c0_5 = arith.constant 0 : index
    %9 = vector.load %arg6[%c0_4, %c0_5] : memref<1x128xf32, #tpu.memory_space<vmem>>, vector<1x128xf32>
    tpu.vector_store %arg6[%c0_4, %c0_5], %8 {strides = array<i32>} : memref<1x128xf32, #tpu.memory_space<vmem>>, vector<1x128xf32>,
    %10 = tpu.transpose %3, [1, 0] : vector<16x128xf32> -> vector<128x16xf32>
    %11 = arith.truncf %10 : vector<128x16xf32> to vector<128x16xbf16>
    %c0_6 = arith.constant 0 : index
    %c0_7 = arith.constant 0 : index
    %12 = vector.load %arg4[%c0_6, %c0_7] : memref<128x16xbf16, #tpu.memory_space<vmem>>, vector<128x16xbf16>
    tpu.vector_store %arg4[%c0_6, %c0_7], %11 {strides = array<i32>} : memref<128x16xbf16, #tpu.memory_space<vmem>>, vector<128x16xbf16>,
    %13 = tpu.iota {dimensions = array<i32: 1>} : vector<1x128xi32>
    %c64_i32 = arith.constant 64 : i32
    %c0_i32 = arith.constant 0 : i32
    %14 = arith.cmpi eq, %c64_i32, %c0_i32 : i32
    %c1_i32 = arith.constant 1 : i32
    %15 = arith.select %14, %c1_i32, %c64_i32 : i32
    %16 = vector.broadcast %15 : i32 to vector<1x128xi32>
    %17 = arith.remsi %13, %16 : vector<1x128xi32>
    %c0_i32_8 = arith.constant 0 : i32
    %18 = vector.broadcast %c0_i32_8 : i32 to vector<1x128xi32>
    %19 = arith.cmpi ne, %17, %18 : vector<1x128xi32>
    %c0_i32_9 = arith.constant 0 : i32
    %20 = vector.broadcast %c0_i32_9 : i32 to vector<1x128xi32>
    %21 = arith.cmpi slt, %17, %20 : vector<1x128xi32>
    %c0_i32_10 = arith.constant 0 : i32
    %22 = arith.cmpi slt, %15, %c0_i32_10 : i32
    %23 = vector.broadcast %22 : i1 to vector<1x128xi1>
    %24 = vector.broadcast %23 : vector<1x128xi1> to vector<1x128xi1>
    %25 = arith.xori %21, %24 : vector<1x128xi1>
    %26 = arith.andi %25, %19 : vector<1x128xi1>
    %27 = vector.broadcast %15 : i32 to vector<1x128xi32>
    %28 = arith.addi %17, %27 : vector<1x128xi32>
    %29 = arith.select %26, %28, %17 : vector<1x128xi1>, vector<1x128xi32>
    %c0_11 = arith.constant 0 : index
    %30 = memref.load %arg3[%c0_11] : memref<1xf32, #tpu.memory_space<smem>>
    %31 = vector.broadcast %30 : f32 to vector<1x128xf32>
    %32 = vector.extract_strided_slice %4 {offsets = [0, 0], sizes = [1, 128], strides = [1, 1]} : vector<3x128xf32> to vector<1x128xf32>
    %c2_i32 = arith.constant 2 : i32
    %33 = tpu.dynamic_rotate %32 by %c2_i32 dim 1 : vector<1x128xf32>, i32 -> vector<1x128xf32>
    %c2_i32_12 = arith.constant 2 : i32
    %34 = vector.broadcast %c2_i32_12 : i32 to vector<1x128xi32>
    %35 = arith.cmpi sge, %29, %34 : vector<1x128xi32>
    %cst_13 = arith.constant 0.000000e+00 : f32
    %36 = vector.broadcast %cst_13 : f32 to vector<1x128xf32>
    %37 = arith.select %35, %33, %36 : vector<1x128xi1>, vector<1x128xf32>
    %38 = arith.addf %31, %37 : vector<1x128xf32>
    %39 = vector.extract_strided_slice %4 {offsets = [1, 0], sizes = [1, 128], strides = [1, 1]} : vector<3x128xf32> to vector<1x128xf32>
    %c1_i32_14 = arith.constant 1 : i32
    %40 = tpu.dynamic_rotate %39 by %c1_i32_14 dim 1 : vector<1x128xf32>, i32 -> vector<1x128xf32>
    %c1_i32_15 = arith.constant 1 : i32
    %41 = vector.broadcast %c1_i32_15 : i32 to vector<1x128xi32>
    %42 = arith.cmpi sge, %29, %41 : vector<1x128xi32>
    %cst_16 = arith.constant 0.000000e+00 : f32
    %43 = vector.broadcast %cst_16 : f32 to vector<1x128xf32>
    %44 = arith.select %42, %40, %43 : vector<1x128xi1>, vector<1x128xf32>
    %45 = arith.addf %38, %44 : vector<1x128xf32>
    %46 = vector.extract_strided_slice %4 {offsets = [2, 0], sizes = [1, 128], strides = [1, 1]} : vector<3x128xf32> to vector<1x128xf32>
    %47 = arith.addf %45, %46 : vector<1x128xf32>
    %48 = arith.negf %47 : vector<1x128xf32>
    %49 = math.exp %48 : vector<1x128xf32>
    %cst_17 = arith.constant 1.000000e+00 : f32
    %50 = vector.broadcast %cst_17 : f32 to vector<1x128xf32>
    %51 = arith.addf %50, %49 : vector<1x128xf32>
    %52 = arith.divf %50, %51 : vector<1x128xf32>
    %c0_18 = arith.constant 0 : index
    %c0_19 = arith.constant 0 : index
    %53 = vector.load %arg5[%c0_18, %c0_19] : memref<1x128xf32, #tpu.memory_space<vmem>>, vector<1x128xf32>
    tpu.vector_store %arg5[%c0_18, %c0_19], %52 {strides = array<i32>} : memref<1x128xf32, #tpu.memory_space<vmem>>, vector<1x128xf32>,
    return
  }
  func.func @transform_0(%arg0: i32) -> (i32, i32) {
    %c0_i32 = arith.constant 0 : i32
    %c0_i32_0 = arith.constant 0 : i32
    return %arg0, %c0_i32 : i32, i32
  }
  func.func @transform_1(%arg0: i32) -> (i32, i32) {
    %c0_i32 = arith.constant 0 : i32
    %c0_i32_0 = arith.constant 0 : i32
    %c0_i32_1 = arith.constant 0 : i32
    return %c0_i32, %c0_i32_0 : i32, i32
  }
  func.func @transform_2(%arg0: i32) -> i32 {
    %c0_i32 = arith.constant 0 : i32
    %c0_i32_0 = arith.constant 0 : i32
    return %c0_i32 : i32
  }
  func.func @transform_3(%arg0: i32) -> (i32, i32) {
    %c0_i32 = arith.constant 0 : i32
    %c0_i32_0 = arith.constant 0 : i32
    return %arg0, %c0_i32 : i32, i32
  }
  func.func @transform_4(%arg0: i32) -> (i32, i32) {
    %c0_i32 = arith.constant 0 : i32
    %c0_i32_0 = arith.constant 0 : i32
    return %c0_i32, %arg0 : i32, i32
  }
  func.func @transform_5(%arg0: i32) -> (i32, i32) {
    %c0_i32 = arith.constant 0 : i32
    %c0_i32_0 = arith.constant 0 : i32
    return %c0_i32, %arg0 : i32, i32
  }
}

</mosaic_0001>

<bundles_post_ra>
// kernel: tpu_custom_call.1
= control target key start
LH: loop header
LB: loop body
LE: loop exit
PB: predicated region body
PF: predicated region fallthrough
CT: control target
= control target key end

     0   :  { %s1191_s0 = inlined_call_operand.vmem [shape: bf16[256,32], index: 0, kind: input, shape index: {}]   ;;  %s1192_s1 = inlined_call_operand.vmem [shape: bf16[19,32], index: 1, kind: input, shape index: {}]   ;;  %s1193_s2 = inlined_call_operand.<no memory space> [shape: f32[1], index: 2, kind: input, shape index: {}]   ;;  %s1194_s3 = inlined_call_operand.vmem [shape: bf16[256,16], index: 3, kind: output, shape index: {0}]   ;;  %s1195_s4 = inlined_call_operand.hbm [shape: f32[1,256], index: 4, kind: output, shape index: {1}]   ;;  %s1196_s5 = inlined_call_operand.hbm [shape: f32[1,256], index: 5, kind: output, shape index: {2}]  }
   0x1   :  { %11 = sst [smem:[#allocation2]] %s1193_s2 }
   0x2   :  { %12 = vsyncpa [#allocation4], 0 }
   0x3   :  { %14 = vsyncpa [#allocation4 + $0x1], 0 }
   0x4   :  { %15 = vsyncpa [#allocation6], 0 }
   0x5   :  { %17 = vsyncpa [#allocation6 + $0x1], 0  ;;  %s998_s20 = smov 0   ;;  %s1000_s21 = smov 0  }
   0x6   :  { %s1002_s22 = smov 0   ;;  %s1004_s23 = smov 0  }
   0x7 LB: > { %s710_s2 = sadd.s32 4294967295, %s959_s23   ;;  %s711_s24 = sadd.s32 4294967294, %s959_s23   ;;  %s959_s23 = sphi %s1004_s23, %s1202_s23   ;;  %s955_s22 = sphi %s1002_s22, %s1201_s22   ;;  %s951_s21 = sphi %s1000_s21, %s1200_s21   ;;  %s947_s20 = sphi %s998_s20, %s1199_s20  }
   0x8   : > { %s1021_s25 = sadd.s32 1, %s959_s23   ;;  %s124_s26 = sadd.s32 1, %s955_s22 }
   0x9   : > { %s121_s27 = ssub.s32 %s959_s23, %s1021_s25  ;;  %p134_p0 = scmp.ne.s32.totalorder %s955_s22, %s951_s21 }
   0xa   : > { %p122_p1 = scmp.eq.s32.totalorder %s121_s27, 0  ;;  %p135_p2 = scmp.eq.s32.totalorder %s710_s2, 1 }
   0xb   : > { %p140_p3 = scmp.ne.s32.totalorder %s951_s21, %s947_s20  ;;  %p141_p4 = scmp.eq.s32.totalorder %s711_s24, 1 }
   0xc   : > { %s1031_s28 = scalar_select %p122_p1, %s955_s22, %s124_s26  }
   0xd   : > { %p1033_p5 = por %p135_p2, %p134_p0  ;;  %p1037_p6 = por %p141_p4, %p140_p3 }
   0xe   : > { %p714_p7 = scmp.ge.s32.totalorder %s959_s23, 1  ;;  %p200_p8 = scmp.lt.s32.totalorder %s959_s23, 3 }
  0x10   : > { %p201_p9 = pnand %p714_p7, %p200_p8 }
  0x11   : > { %s1043_s6 = sshll.u32 (!%p201_p9), %s710_s2, 4  ;;  %s961_s16 = smov (!%p201_p9), 2  }
  0x12   : > { %204 = sbr.rel (%p201_p9) target bundleno = 486 (0x1e6), region = 32  ;;  %p237_p10 = scmp.lt.s32.totalorder (!%p201_p9), %s1043_s6, 31 }
  0x13   : > { %s962_s17 = smov (!%p201_p9), 1   ;;  %s1084_s18 = sand.u32 (!%p201_p9), 1, %s951_s21  }
  0x14   : > { %s235_s19 = scalar_lea.vmem (!%p201_p9), [#allocation5], %s1084_s18  ;;  %s601_s27 = scalar_lea.hbm (!%p201_p9), %s1196_s5, %s1043_s6 }
  0x15   : > { %s603_s2 = sshll.u32 (!%p201_p9), %s235_s19, 4  ;;  %s574_s7 = scalar_lea.sflag (!%p201_p9), [#allocation6], %s1084_s18  ;;  %s604_s2 = int_to_ptr.vmem [resolvable:$true] %s603_s2 }
  0x16   : > { %s869_s8 = scalar_lea.vmem (!%p201_p9), %s604_s2, 16  ;;  %s963_s11 = smov (!%p201_p9), [#allocation5]  }
  0x17   : > { %v861_v0 = vld [vmem:[%s1192_s1] sm:$0xff]   ;;  %vm316_vm0 = vcmask 261120   ;;  %s1050_s9 = scalar_select %p237_p10, %s1043_s6, 31  ;;  %v862_v17 = vld [vmem:[%s1192_s1 + $0x8] ss:$0 sps:$4 sm:$0x33]  }
  0x18   : > { %794 = vmatprep.mubr.msk.bf16.mxu0 %vm316_vm0, %v861_v0  ;;  %p870_p11 = scmp.ne.s32.totalorder %s604_s2, %s869_s8  ;;  %s873_s12 = sshll.u32 %s963_s11, 4  ;;  %s874_s12 = int_to_ptr.vmem [resolvable:$false] %s873_s12 }
  0x19   : > { %s716_s10 = sshll.u32 %s1050_s9, 2  ;;  %p876_p0 = scmp.lt.s32.totalorder %s604_s2, %s874_s12 }
  0x1a   : > { %s240_s13 = scalar_lea.vmem %s1191_s0, %s716_s10  ;;  %p871_p12 = pnand %p870_p11, %p1033_p5 }
  0x1b   : > { %v853_v1 = vld [vmem:[%s240_s13 + $0x38] sm:$0xff]   ;;  %v854_v2 = vld [vmem:[%s240_s13 + $0x30] sm:$0xff]   ;;  %v855_v5 = vld [vmem:[%s240_s13 + $0x28] sm:$0xff]  }
  0x1c   : > { %798 = vmatprep.subr.msk.bf16.mxu0 %vm316_vm0, %v853_v1  ;;  %v345_v3 = vsel %vm316_vm0, %v853_v1, 0  ;;  %v342_v4 = vsel %vm316_vm0, %v854_v2, 0  ;;  %v339_v6 = vsel %vm316_vm0, %v855_v5, 0  ;;  %v856_v7 = vld [vmem:[%s240_s13 + $0x20] sm:$0xff]   ;;  %v857_v9 = vld [vmem:[%s240_s13 + $0x18] sm:$0xff]   ;;  %v858_v11 = vld [vmem:[%s240_s13 + $0x10] sm:$0xff]   ;;  %p872_p13 = pneg %p871_p12 }
  0x1d   : > { %779 = vmatpush3.bf16.xpose.msra.mxu0 %v345_v3  ;;  %v336_v8 = vsel %vm316_vm0, %v856_v7, 0  ;;  %v333_v10 = vsel %vm316_vm0, %v857_v9, 0  ;;  %v330_v12 = vsel %vm316_vm0, %v858_v11, 0  ;;  %v859_v13 = vld [vmem:[%s240_s13 + $0x8] sm:$0xff]   ;;  %v860_v15 = vld [vmem:[%s240_s13] sm:$0xff]   ;;  %s875_s13 = scalar_lea.vmem %s874_s12, 32 }
  0x1e   : > { %799 = vmatprep.subr.msk.bf16.mxu0 %vm316_vm0, %v854_v2  ;;  %v327_v14 = vsel %vm316_vm0, %v859_v13, 0  ;;  %v324_v16 = vsel %vm316_vm0, %v860_v15, 0  ;;  %p877_p1 = scmp.lt.s32.totalorder %s875_s13, %s869_s8 }
  0x20   : > { %p878_p2 = por %p877_p1, %p876_p0 }
  0x22   : > { %p879_p3 = pnand %p878_p2, %p872_p13 }
  0x25   : > { %781 = vmatpush3.bf16.xpose.msra.mxu0 %v342_v4 }
  0x26   : > { %800 = vmatprep.subr.msk.bf16.mxu0 %vm316_vm0, %v855_v5 }
  0x2d   : > { %783 = vmatpush3.bf16.xpose.msra.mxu0 %v339_v6 }
  0x2e   : > { %801 = vmatprep.subr.msk.bf16.mxu0 %vm316_vm0, %v856_v7 }
  0x35   : > { %785 = vmatpush3.bf16.xpose.msra.mxu0 %v336_v8 }
  0x36   : > { %802 = vmatprep.subr.msk.bf16.mxu0 %vm316_vm0, %v857_v9 }
  0x3d   : > { %787 = vmatpush3.bf16.xpose.msra.mxu0 %v333_v10 }
  0x3e   : > { %803 = vmatprep.subr.msk.bf16.mxu0 %vm316_vm0, %v858_v11 }
  0x45   : > { %789 = vmatpush3.bf16.xpose.msra.mxu0 %v330_v12 }
  0x46   : > { %804 = vmatprep.subr.msk.bf16.mxu0 %vm316_vm0, %v859_v13 }
  0x4d   : > { %791 = vmatpush3.bf16.xpose.msra.mxu0 %v327_v14 }
  0x4e   : > { %805 = vmatprep.subr.msk.bf16.mxu0 %vm316_vm0, %v860_v15 }
  0x55   : > { %793 = vmatpush3.bf16.xpose.msra.mxu0 %v324_v16 }
  0x5c   : > { %795 = vmatmul.mubr.msk.bf16.vlgmr.msra.gmra.mxu0 %vm316_vm0, %v862_v17 }
 0x11c   : > { %v1079_v18 = vpop.f32.mrf.mxu0 }
 0x11d   : > { %541 = vrot.lane.b32.xlu0 %v1079_v18, %s961_s16  ;;  %v547_v20 = vrot.slane %v1079_v18, 1 }
 0x11e   : > { %v381_v19 = vpop.f32.mrf.mxu0 }
 0x11f   : > { %412 = vxpose.xlu1.b32.start [1/2] (short) %v381_v19, 128  ;;  %v395_v23 = vmul.f32 %v381_v19, %v381_v19 }
 0x120   : > { %v797_v21 = vpop.f32.mrf.mxu0 }
 0x121   : > { %549 = vrot.lane.b32.xlu0 %v547_v20, %s962_s17 }
 0x122   : > { %v384_v22 = vpop.f32.mrf.mxu0 }
 0x123   : > { %v396_v24 = vmul.f32 %v384_v22, %v384_v22  ;;  %413 = vxpose.xlu1.b32.end [2/2] (short) %v384_v22, 128 }
 0x125   : > { %v397_v25 = vadd.f32 %v396_v24, %v395_v23 }
 0x127   : > { %v398_v26 = vrot.slane %v397_v25, 4 }
 0x129   : > { %v399_v27 = vadd.f32 %v398_v26, %v397_v25 }
 0x12b   : > { %v400_v28 = vrot.slane %v399_v27, 2 }
 0x12d   : > { %v401_v29 = vadd.f32 %v400_v28, %v399_v27 }
 0x12f   : > { %v402_v30 = vrot.slane %v401_v29, 1 }
 0x131   : > { %v403_v31 = vadd.f32 %v402_v30, %v401_v29 }
 0x133   : > { %863 = vrsqrt.f32 %v403_v31  ;;  %vm406_vm1 = vcmp.eq.f32.partialorder %v403_v31, inf  ;;  %v409_v34 = vand.u32 2147483648, %v403_v31  ;;  %vm408_vm2 = vcmp.eq.f32.partialorder %v403_v31, 0.0 }
 0x140   : > { %v864_v32 = vpop.eup %863 }
 0x141   : > { %v405_v33 = vmul.f32 %v864_v32, %v403_v31 }
 0x143   : > { %v407_v35 = vsel %vm406_vm1, %v403_v31, %v405_v33 }
 0x144   : > { %v410_v36 = vsel %vm408_vm2, %v409_v34, %v407_v35 }
 0x145   : > { %411 = vst [vmem:[%s235_s19] sm:$0x1] %v410_v36 }
 0x146   : > { %882 = shalt.err (!%p879_p3)
}
 0x147   : > { %s883_s14 = scalar_lea.hbm %s601_s27, 16  ;;  %s887_s17 = scalar_lea.hbm %s1196_s5, 32 }
 0x148   : > { %p884_p4 = scmp.ne.s32.totalorder %s601_s27, %s883_s14  ;;  %p888_p9 = scmp.lt.s32.totalorder %s601_s27, %s1196_s5 }
 0x149   : > { %p889_p10 = scmp.lt.s32.totalorder %s887_s17, %s883_s14 }
 0x14a   : > { %p885_p7 = pnand %p884_p4, %p1033_p5 }
 0x14b   : > { %p890_p11 = por %p889_p10, %p888_p9 }
 0x14c   : > { %p886_p8 = pneg %p885_p7 }
 0x14e   : > { %p891_p12 = pnand %p890_p11, %p886_p8 }
 0x150   : > { %894 = shalt.err (!%p891_p12)
}
 0x151   : > { %807 = dma.vmem_to_hbm [thread:$0]  (%p1033_p5), %s604_s2, 16, %s601_s27, %s574_s7   ;;  %v525_v37 = vlaneseq  ;;  %v554_v46 = vrot.slane %v1079_v18, 2  ;;  %vm508_vm5 = vcmask 125952  }
 0x152   : > { %s539_s26 = sld [smem:[#allocation2]]  ;;  %s1110_s7 = scalar_lea.vmem %s1194_s3, %s716_s10 }
 0x153   : > { %v526_v38 = vand.u32 127, %v525_v37  ;;  %s229_s9 = scalar_lea.vmem [#allocation3], %s1084_s18  ;;  %s1131_s12 = scalar_lea.hbm %s1195_s4, %s1043_s6 }
 0x154   : > { %s590_s10 = sshll.u32 %s229_s9, 4  ;;  %s570_s13 = scalar_lea.sflag [#allocation4], %s1084_s18  ;;  %s1133_s10 = int_to_ptr.vmem [resolvable:$true] %s590_s10 }
 0x155   : > { %v531_v39 = vand.u32 63, %v526_v38  ;;  %s895_s14 = scalar_lea.vmem %s1133_s10, 16  ;;  %s964_s15 = smov [#allocation3]  }
 0x156   : > { %p896_p13 = scmp.ne.s32.totalorder %s1133_s10, %s895_s14  ;;  %s899_s16 = sshll.u32 %s964_s15, 4  ;;  %s900_s16 = int_to_ptr.vmem [resolvable:$false] %s899_s16 }
 0x157   : > { %vm543_vm3 = vcmp.ge.s32.totalorder %v531_v39, 2  ;;  %vm551_vm4 = vcmp.ge.s32.totalorder %v531_v39, 1  ;;  %s901_s6 = scalar_lea.vmem %s900_s16, 32  ;;  %p902_p2 = scmp.lt.s32.totalorder %s1133_s10, %s900_s16 }
 0x158   : > { %v540_v41 = vstv %s539_s26  ;;  %p897_p0 = pnand %p896_p13, %p1033_p5  ;;  %p903_p3 = scmp.lt.s32.totalorder %s901_s6, %s895_s14 }
 0x15a   : > { %p898_p1 = pneg %p897_p0  ;;  %p904_p4 = por %p903_p3, %p902_p2 }
 0x15c   : > { %p905_p7 = pnand %p904_p4, %p898_p1 }
 0x18f   : > { %v542_v40 = vpop.permute.xlu0 %541 }
 0x190   : > { %v544_v42 = vsel %vm543_vm3, %v542_v40, 0.0 }
 0x191   : > { %v545_v43 = vadd.f32 %v544_v42, %v540_v41 }
 0x193   : > { %v550_v44 = vpop.permute.xlu0 %549 }
 0x194   : > { %v552_v45 = vsel %vm551_vm4, %v550_v44, 0.0 }
 0x195   : > { %v553_v47 = vadd.f32 %v552_v45, %v545_v43 }
 0x197   : > { %v556_v48 = vadd.f32 %v554_v46, %v553_v47 }
 0x199   : > { %v747_v49 = vmul.f32 -1.442695, %v556_v48 }
 0x19b   : > { %865 = vpow2.f32 %v747_v49  ;;  %v428_v50 = vpop.trf.xlu1 }
 0x19c   : > { %v752_v51 = vpack.c.bf16 %v428_v50, %v428_v50 }
 0x19e   : > { %509 = vst.msk [vmem:[%s1110_s7] sm:$0xf] %vm508_vm5, %v752_v51 }
 0x19f   : > { %v429_v52 = vpop.trf.xlu1 }
 0x1a0   : > { %v753_v53 = vpack.c.bf16 %v429_v52, %v429_v52 }
 0x1a2   : > { %510 = vst.msk [vmem:[%s1110_s7 + $0x4] sm:$0xf] %vm508_vm5, %v753_v53 }
 0x1a3   : > { %v430_v54 = vpop.trf.xlu1 }
 0x1a4   : > { %v754_v55 = vpack.c.bf16 %v430_v54, %v430_v54 }
 0x1a6   : > { %511 = vst.msk [vmem:[%s1110_s7 + $0x8] sm:$0xf] %vm508_vm5, %v754_v55 }
 0x1a7   : > { %v431_v56 = vpop.trf.xlu1 }
 0x1a8   : > { %v866_v57 = vpop.eup %865  ;;  %v755_v58 = vpack.c.bf16 %v431_v56, %v431_v56 }
 0x1a9   : > { %v560_v59 = vadd.f32 1.0, %v866_v57 }
 0x1aa   : > { %512 = vst.msk [vmem:[%s1110_s7 + $0xc] sm:$0xf] %vm508_vm5, %v755_v58 }
 0x1ab   : > { %867 = vrcp.f32 %v560_v59  ;;  %v432_v60 = vpop.trf.xlu1 }
 0x1ac   : > { %v756_v61 = vpack.c.bf16 %v432_v60, %v432_v60 }
 0x1ae   : > { %513 = vst.msk [vmem:[%s1110_s7 + $0x10] sm:$0xf] %vm508_vm5, %v756_v61 }
 0x1af   : > { %v433_v62 = vpop.trf.xlu1 }
 0x1b0   : > { %v757_v63 = vpack.c.bf16 %v433_v62, %v433_v62 }
 0x1b2   : > { %514 = vst.msk [vmem:[%s1110_s7 + $0x14] sm:$0xf] %vm508_vm5, %v757_v63 }
 0x1b3   : > { %v434_v0 = vpop.trf.xlu1 }
 0x1b4   : > { %v758_v1 = vpack.c.bf16 %v434_v0, %v434_v0 }
 0x1b6   : > { %515 = vst.msk [vmem:[%s1110_s7 + $0x18] sm:$0xf] %vm508_vm5, %v758_v1 }
 0x1b7   : > { %v435_v2 = vpop.trf.xlu1 }
 0x1b8   : > { %v868_v3 = vpop.eup %867  ;;  %v759_v4 = vpack.c.bf16 %v435_v2, %v435_v2 }
 0x1b9   : > { %563 = vst [vmem:[%s229_s9] sm:$0x1] %v868_v3 }
 0x1ba   : > { %516 = vst.msk [vmem:[%s1110_s7 + $0x1c] sm:$0xf] %vm508_vm5, %v759_v4 }
 0x1bb   : > { %908 = shalt.err (!%p905_p7)
}
 0x1bc   : > { %s909_s17 = scalar_lea.hbm %s1131_s12, 16  ;;  %s913_s24 = scalar_lea.hbm %s1195_s4, 32 }
 0x1bd   : > { %p910_p8 = scmp.ne.s32.totalorder %s1131_s12, %s909_s17  ;;  %p914_p11 = scmp.lt.s32.totalorder %s1131_s12, %s1195_s4 }
 0x1be   : > { %p915_p12 = scmp.lt.s32.totalorder %s913_s24, %s909_s17 }
 0x1bf   : > { %p911_p9 = pnand %p910_p8, %p1033_p5 }
 0x1c0   : > { %p916_p13 = por %p915_p12, %p914_p11 }
 0x1c1   : > { %p912_p10 = pneg %p911_p9 }
 0x1c3   : > { %p917_p0 = pnand %p916_p13, %p912_p10 }
 0x1c5   : > { %920 = shalt.err (!%p917_p0)
}
 0x1c6   : > { %806 = dma.vmem_to_hbm [thread:$0]  (%p1033_p5), %s1133_s10, 16, %s1131_s12, %s570_s13   ;;  %v436_v5 = vpop.trf.xlu1 }
 0x1c7   : > { %v760_v6 = vpack.c.bf16 %v436_v5, %v436_v5 }
 0x1c9   : > { %517 = vst.msk [vmem:[%s1110_s7 + $0x20] sm:$0xf] %vm508_vm5, %v760_v6 }
 0x1ca   : > { %v437_v7 = vpop.trf.xlu1 }
 0x1cb   : > { %v761_v8 = vpack.c.bf16 %v437_v7, %v437_v7 }
 0x1cd   : > { %518 = vst.msk [vmem:[%s1110_s7 + $0x24] sm:$0xf] %vm508_vm5, %v761_v8 }
 0x1ce   : > { %v438_v9 = vpop.trf.xlu1 }
 0x1cf   : > { %v762_v10 = vpack.c.bf16 %v438_v9, %v438_v9 }
 0x1d1   : > { %519 = vst.msk [vmem:[%s1110_s7 + $0x28] sm:$0xf] %vm508_vm5, %v762_v10 }
 0x1d2   : > { %v439_v11 = vpop.trf.xlu1 }
 0x1d3   : > { %v763_v12 = vpack.c.bf16 %v439_v11, %v439_v11 }
 0x1d5   : > { %520 = vst.msk [vmem:[%s1110_s7 + $0x2c] sm:$0xf] %vm508_vm5, %v763_v12 }
 0x1d6   : > { %v440_v13 = vpop.trf.xlu1 }
 0x1d7   : > { %v764_v14 = vpack.c.bf16 %v440_v13, %v440_v13 }
 0x1d9   : > { %521 = vst.msk [vmem:[%s1110_s7 + $0x30] sm:$0xf] %vm508_vm5, %v764_v14 }
 0x1da   : > { %v441_v15 = vpop.trf.xlu1 }
 0x1db   : > { %v765_v16 = vpack.c.bf16 %v441_v15, %v441_v15 }
 0x1dd   : > { %522 = vst.msk [vmem:[%s1110_s7 + $0x34] sm:$0xf] %vm508_vm5, %v765_v16 }
 0x1de   : > { %v442_v17 = vpop.trf.xlu1 }
 0x1df   : > { %v766_v18 = vpack.c.bf16 %v442_v17, %v442_v17 }
 0x1e1   : > { %523 = vst.msk [vmem:[%s1110_s7 + $0x38] sm:$0xf] %vm508_vm5, %v766_v18 }
 0x1e2   : > { %v443_v19 = vpop.trf.xlu1 }
 0x1e3   : > { %v767_v20 = vpack.c.bf16 %v443_v19, %v443_v19 }
 0x1e5   : > { %524 = vst.msk [vmem:[%s1110_s7 + $0x3c] sm:$0xf] %vm508_vm5, %v767_v20 }
 0x1e6 PF: > { %p817_p5 = scmp.ge.s32.totalorder %s959_s23, 2  ;;  %s623_s29 = sand.u32 1, %s947_s20  }
 0x1e7   : > { %s624_s27 = scalar_lea.sflag [#allocation4], %s623_s29 }
 0x1e8   : > { %p811_p1 = pnand %p817_p5, %p1037_p6 }
 0x1ea   : > { %p812_p2 = pneg %p811_p1 }
 0x1ec   : > { %938 = dma.done.wait (%p812_p2), %s624_s27, 16  }
 0x1ed   : > { %940 = vsyncadd (%p812_p2), %s624_s27, 4294967280  ;;  %s632_s9 = scalar_lea.sflag [#allocation6], %s623_s29 }
 0x1ee   : > { %942 = dma.done.wait (%p812_p2), %s632_s9, 16  }
 0x1ef   : > { %944 = vsyncadd (%p812_p2), %s632_s9, 4294967280  ;;  %p20_p3 = scmp.ge.s32.totalorder %s1021_s25, 4   ;;  %s1199_s20 = smov %s951_s21 }
 0x1f0   : > { %s1200_s21 = smov %s955_s22  ;;  %s1201_s22 = smov %s1031_s28 }
 0x1f1   : > { %s1202_s23 = smov %s1021_s25  ;;  %22 = sbr.rel (!%p20_p3) target bundleno = 7 (0x7), region = 96 }
 0x1f6   :  { %636 = vsyncpa [#allocation4], 1 }
 0x1f7   :  { %638 = vsyncpa [#allocation4 + $0x1], 1 }
 0x1f8   :  { %639 = vsyncpa [#allocation6], 1 }
 0x1f9   :  { %641 = vsyncpa [#allocation6 + $0x1], 1 }

</bundles_post_ra>
